<compile_context>
chip_gen: v7x
topology: tpu7x:2x2x1
jax: 0.10.0
libtpu: 0.0.40
codegen_flags: <defaults>
</compile_context>

<pallas_src>
import functools

import jax
import jax.numpy as jnp
import numpy as np
from jax import lax
from jax.experimental import pallas as pl
from jax.experimental.pallas import tpu as pltpu

EPS = 1e-6        # module-level EPS in the PyTorch file
BN_EPS = 1e-5     # nn.BatchNorm2d default eps
NEG_SLOPE = 0.2


def _vnt_kernel(w_ref, x_ref, out_ref, *, c_in, n_valid, negative_slope):
    """One grid step == one output channel.

    w_ref  : [3*C_out, C_in] SMEM  rows 3*co+0: feat, 3*co+1: dir - src, 3*co+2: src
    x_ref  : [C_in, 3, BM, Np] VMEM (resident across all grid steps)
    out_ref: [3, BM, Np]       VMEM (output channel `co` of this grid step)
    """
    co = pl.program_id(0)
    rf = co * 3

    bm = out_ref.shape[1]
    npad = out_ref.shape[2]
    ns = negative_slope

    # ---- channel mixes: single pass over C_in, per-channel VMEM reads ----
    xc = x_ref[0]                          # [3, BM, Np]
    p = w_ref[rf, 0] * xc                  # map_to_feat
    d = w_ref[rf + 1, 0] * xc              # map_to_dir - map_to_src (folded in wrapper)
    o = w_ref[rf + 2, 0] * xc              # map_to_src
    for ci in range(1, c_in):              # unrolled at trace time (small C_in)
        xc = x_ref[ci]
        p = p + w_ref[rf, ci] * xc
        d = d + w_ref[rf + 1, ci] * xc
        o = o + w_ref[rf + 2, ci] * xc

    # ---- mean over N_samples (lane axis); zero-padded lanes contribute 0 ----
    mean_val = jnp.sum(p, axis=-1, keepdims=True) * (1.0 / n_valid)    # [3, BM, 1]
    pc = p - mean_val

    # ---- VNTBatchNorm: BatchNorm2d (training mode, biased stats, eps=1e-5),
    #      batch statistics masked to the n_valid real lanes ----
    norm = jnp.sqrt(jnp.sum(pc * pc, axis=0)) + EPS                    # [BM, Np]
    lane = lax.broadcasted_iota(jnp.int32, (bm, npad), 1)
    valid = lane < n_valid
    inv_cnt = 1.0 / (bm * n_valid)
    mu = jnp.sum(jnp.where(valid, norm, 0.0), axis=(0, 1), keepdims=True) * inv_cnt
    diff = norm - mu
    var = jnp.sum(jnp.where(valid, diff * diff, 0.0), axis=(0, 1), keepdims=True) * inv_cnt
    # fused rescale:  p <- pc * (norm_bn / norm) + mean_val   (1 EUP recip, no divides)
    scale = diff * lax.rsqrt(var + BN_EPS) * pl.reciprocal(norm, approx=True)
    p = pc * scale + mean_val

    # ---- directional LeakyReLU, algebraically fused:
    #      out = p - (1-ns) * min(dotprod, 0) / (|d|^2 + EPS) * d ----
    dotprod = jnp.sum((p - o) * d, axis=0)                             # [BM, Np]
    d_norm_sq = jnp.sum(d * d, axis=0)
    coef = ((1.0 - ns) * jnp.where(dotprod < 0, dotprod, 0.0)
            * pl.reciprocal(d_norm_sq + EPS, approx=True))
    out_ref[...] = p - coef * d


def vnt_linear_leaky_relu(x, w_feat_param, w_dir_param, w_src_param,
                          negative_slope=NEG_SLOPE):
    """x: [B, C_in, 3, N, M] float32 -> [B, C_out, 3, N, M] float32."""
    B, C_in, three, N, M = x.shape
    assert three == 3
    C_out = w_feat_param.shape[0]
    BM = B * M
    Np = ((N + 127) // 128) * 128          # lane-dense last dim

    # forward-time 'softmax' weight normalization (glue, once per call)
    wf = jax.nn.softmax(w_feat_param, axis=1)          # [C_out, C_in]
    wd = jax.nn.softmax(w_dir_param, axis=1)           # [C_out, C_in]
    ws = jax.nn.softmax(w_src_param, axis=1)           # [1, C_in]

    # fold shared source direction into the dir weights: d = (wd - ws)·x
    w_stk = jnp.stack([wf, wd - ws, jnp.broadcast_to(ws, wf.shape)], axis=1)
    w_stk = w_stk.reshape(C_out * 3, C_in)             # [3*C_out, C_in]

    # layout: [B, C_in, 3, N, M] -> [C_in, 3, B*M, N], pad N -> Np with zeros.
    # TODO(synk): this permutation is not expressible via BlockSpec index_maps,
    #             so it stays a (jit-fused) wrapper-side transpose.
    xk = jnp.transpose(x, (1, 2, 0, 4, 3)).reshape(C_in, 3, BM, N)
    if Np != N:
        xk = jnp.pad(xk, ((0, 0), (0, 0), (0, 0), (0, Np - N)))

    kern = functools.partial(_vnt_kernel, c_in=C_in, n_valid=N,
                             negative_slope=float(negative_slope))

    out_k = pl.pallas_call(
        kern,
        out_shape=jax.ShapeDtypeStruct((C_out, 3, BM, Np), jnp.float32),
        grid=(C_out,),
        in_specs=[
            pl.BlockSpec(memory_space=pltpu.MemorySpace.SMEM),            # weights
            pl.BlockSpec((C_in, 3, BM, Np), lambda co: (0, 0, 0, 0)),     # x (resident)
        ],
        out_specs=pl.BlockSpec((pl.Squeezed(), 3, BM, Np),
                               lambda co: (co, 0, 0, 0)),
        compiler_params=pltpu.CompilerParams(
            dimension_semantics=("parallel",),
            vmem_limit_bytes=32 * 1024 * 1024,
        ),
    )(w_stk, xk)

    # [C_out, 3, BM, Np] -> strip lane padding -> [B, C_out, 3, N, M]
    out_k = out_k[..., :N].reshape(C_out, 3, B, M, N)
    return jnp.transpose(out_k, (2, 0, 1, 4, 3))


def _ref_forward(x, w_feat_param, w_dir_param, w_src_param, ns=NEG_SLOPE):
    """Pure-JAX reference mirroring the PyTorch forward (training-mode BN)."""
    def lin(xx, w_param):
        w = jax.nn.softmax(w_param, axis=1)
        return jnp.einsum('oc,bcznm->boznm', w, xx)

    p = lin(x, w_feat_param)
    mean_val = jnp.mean(p, axis=3, keepdims=True)
    pc = p - mean_val
    norm = jnp.sqrt(jnp.sum(pc * pc, axis=2)) + EPS           # [B, C, N, M]
    mu = jnp.mean(norm, axis=(0, 2, 3), keepdims=True)
    var = jnp.mean((norm - mu) ** 2, axis=(0, 2, 3), keepdims=True)
    norm_bn = (norm - mu) / jnp.sqrt(var + BN_EPS)
    p = pc / norm[:, :, None] * norm_bn[:, :, None] + mean_val

    d = lin(x, w_dir_param)
    o = lin(x, w_src_param)
    d = d - o
    dotprod = jnp.sum((p - o) * d, axis=2, keepdims=True)
    mask = (dotprod >= 0).astype(x.dtype)
    d_norm_sq = jnp.sum(d * d, axis=2, keepdims=True)
    return ns * p + (1 - ns) * (mask * p + (1 - mask) * (p - dotprod / (d_norm_sq + EPS) * d))


if __name__ == "__main__":
    B, C_in, C_out, N, M = 2, 4, 8, 16, 8

    key = jax.random.PRNGKey(0)
    k1, k2, k3, kx = jax.random.split(key, 4)

    # __init__: weight = softmax(rand(out, in)); forward re-applies softmax.
    w_feat_param = jax.nn.softmax(jax.random.uniform(k1, (C_out, C_in), jnp.float32), axis=1)
    w_dir_param = jax.nn.softmax(jax.random.uniform(k2, (C_out, C_in), jnp.float32), axis=1)
    w_src_param = jax.nn.softmax(jax.random.uniform(k3, (1, C_in), jnp.float32), axis=1)
    # (amplification parameter exists in the module but is unused in forward.)

    x = jax.random.normal(kx, (B, C_in, 3, N, M), jnp.float32)

    fwd = jax.jit(vnt_linear_leaky_relu)
    out = jax.block_until_ready(fwd(x, w_feat_param, w_dir_param, w_src_param))

    ref = _ref_forward(x, w_feat_param, w_dir_param, w_src_param)
    assert out.shape == (B, C_out, 3, N, M)
    # The kernel uses EUP approximate reciprocals (per perf guidance); with
    # exact divides it matches to ~1e-5, so a 5e-3 tolerance still catches
    # any real formula/layout bug while allowing the approx-recip error.
    np.testing.assert_allclose(np.asarray(out), np.asarray(ref), rtol=5e-3, atol=5e-3)

    print("KERNEL_OK")
</pallas_src>

<mosaic_0001>
module attributes {stable_mosaic.version = 11 : i64} {
  func.func @_vnt_kernel(%arg0: i32, %arg1: memref<24x4xf32, #tpu.memory_space<smem>>, %arg2: memref<4x3x16x128xf32, #tpu.memory_space<vmem>>, %arg3: memref<1x3x16x128xf32, #tpu.memory_space<vmem>>) attributes {dimension_semantics = [#tpu.dimension_semantics<parallel>], iteration_bounds = array<i64: 8>, scalar_prefetch = 0 : i64, scratch_operands = 0 : i64, tpu.core_type = #tpu.core_type<tc>, window_params = [{transform_indices = @transform_0, window_bounds = array<i64: 24, 4>}, {pipeline_mode = #tpu.pipeline_mode<synchronous>, transform_indices = @transform_1, window_bounds = array<i64: 4, 3, 16, 128>}, {transform_indices = @transform_2, window_bounds = array<i64: 1, 3, 16, 128>}]} {
    %c3_i32 = arith.constant 3 : i32
    %0 = arith.muli %arg0, %c3_i32 : i32
    %c0 = arith.constant 0 : index
    %c0_0 = arith.constant 0 : index
    %c0_1 = arith.constant 0 : index
    %c0_2 = arith.constant 0 : index
    %1 = vector.load %arg2[%c0, %c0_0, %c0_1, %c0_2] : memref<4x3x16x128xf32, #tpu.memory_space<vmem>>, vector<1x3x16x128xf32>
    %2 = vector.shape_cast %1 : vector<1x3x16x128xf32> to vector<3x16x128xf32>
    %3 = arith.index_cast %0 : i32 to index
    %c0_3 = arith.constant 0 : index
    %4 = memref.load %arg1[%3, %c0_3] : memref<24x4xf32, #tpu.memory_space<smem>>
    %5 = vector.broadcast %4 : f32 to vector<3x16x128xf32>
    %6 = arith.mulf %5, %2 : vector<3x16x128xf32>
    %c1_i32 = arith.constant 1 : i32
    %7 = arith.addi %0, %c1_i32 : i32
    %8 = arith.index_cast %7 : i32 to index
    %c0_4 = arith.constant 0 : index
    %9 = memref.load %arg1[%8, %c0_4] : memref<24x4xf32, #tpu.memory_space<smem>>
    %10 = vector.broadcast %9 : f32 to vector<3x16x128xf32>
    %11 = arith.mulf %10, %2 : vector<3x16x128xf32>
    %c2_i32 = arith.constant 2 : i32
    %12 = arith.addi %0, %c2_i32 : i32
    %13 = arith.index_cast %12 : i32 to index
    %c0_5 = arith.constant 0 : index
    %14 = memref.load %arg1[%13, %c0_5] : memref<24x4xf32, #tpu.memory_space<smem>>
    %15 = vector.broadcast %14 : f32 to vector<3x16x128xf32>
    %16 = arith.mulf %15, %2 : vector<3x16x128xf32>
    %c1 = arith.constant 1 : index
    %c0_6 = arith.constant 0 : index
    %c0_7 = arith.constant 0 : index
    %c0_8 = arith.constant 0 : index
    %17 = vector.load %arg2[%c1, %c0_6, %c0_7, %c0_8] : memref<4x3x16x128xf32, #tpu.memory_space<vmem>>, vector<1x3x16x128xf32>
    %18 = vector.shape_cast %17 : vector<1x3x16x128xf32> to vector<3x16x128xf32>
    %19 = arith.index_cast %0 : i32 to index
    %c1_9 = arith.constant 1 : index
    %20 = memref.load %arg1[%19, %c1_9] : memref<24x4xf32, #tpu.memory_space<smem>>
    %21 = vector.broadcast %20 : f32 to vector<3x16x128xf32>
    %22 = arith.mulf %21, %18 : vector<3x16x128xf32>
    %23 = arith.addf %6, %22 : vector<3x16x128xf32>
    %c1_i32_10 = arith.constant 1 : i32
    %24 = arith.addi %0, %c1_i32_10 : i32
    %25 = arith.index_cast %24 : i32 to index
    %c1_11 = arith.constant 1 : index
    %26 = memref.load %arg1[%25, %c1_11] : memref<24x4xf32, #tpu.memory_space<smem>>
    %27 = vector.broadcast %26 : f32 to vector<3x16x128xf32>
    %28 = arith.mulf %27, %18 : vector<3x16x128xf32>
    %29 = arith.addf %11, %28 : vector<3x16x128xf32>
    %c2_i32_12 = arith.constant 2 : i32
    %30 = arith.addi %0, %c2_i32_12 : i32
    %31 = arith.index_cast %30 : i32 to index
    %c1_13 = arith.constant 1 : index
    %32 = memref.load %arg1[%31, %c1_13] : memref<24x4xf32, #tpu.memory_space<smem>>
    %33 = vector.broadcast %32 : f32 to vector<3x16x128xf32>
    %34 = arith.mulf %33, %18 : vector<3x16x128xf32>
    %35 = arith.addf %16, %34 : vector<3x16x128xf32>
    %c2 = arith.constant 2 : index
    %c0_14 = arith.constant 0 : index
    %c0_15 = arith.constant 0 : index
    %c0_16 = arith.constant 0 : index
    %36 = vector.load %arg2[%c2, %c0_14, %c0_15, %c0_16] : memref<4x3x16x128xf32, #tpu.memory_space<vmem>>, vector<1x3x16x128xf32>
    %37 = vector.shape_cast %36 : vector<1x3x16x128xf32> to vector<3x16x128xf32>
    %38 = arith.index_cast %0 : i32 to index
    %c2_17 = arith.constant 2 : index
    %39 = memref.load %arg1[%38, %c2_17] : memref<24x4xf32, #tpu.memory_space<smem>>
    %40 = vector.broadcast %39 : f32 to vector<3x16x128xf32>
    %41 = arith.mulf %40, %37 : vector<3x16x128xf32>
    %42 = arith.addf %23, %41 : vector<3x16x128xf32>
    %c1_i32_18 = arith.constant 1 : i32
    %43 = arith.addi %0, %c1_i32_18 : i32
    %44 = arith.index_cast %43 : i32 to index
    %c2_19 = arith.constant 2 : index
    %45 = memref.load %arg1[%44, %c2_19] : memref<24x4xf32, #tpu.memory_space<smem>>
    %46 = vector.broadcast %45 : f32 to vector<3x16x128xf32>
    %47 = arith.mulf %46, %37 : vector<3x16x128xf32>
    %48 = arith.addf %29, %47 : vector<3x16x128xf32>
    %c2_i32_20 = arith.constant 2 : i32
    %49 = arith.addi %0, %c2_i32_20 : i32
    %50 = arith.index_cast %49 : i32 to index
    %c2_21 = arith.constant 2 : index
    %51 = memref.load %arg1[%50, %c2_21] : memref<24x4xf32, #tpu.memory_space<smem>>
    %52 = vector.broadcast %51 : f32 to vector<3x16x128xf32>
    %53 = arith.mulf %52, %37 : vector<3x16x128xf32>
    %54 = arith.addf %35, %53 : vector<3x16x128xf32>
    %c3 = arith.constant 3 : index
    %c0_22 = arith.constant 0 : index
    %c0_23 = arith.constant 0 : index
    %c0_24 = arith.constant 0 : index
    %55 = vector.load %arg2[%c3, %c0_22, %c0_23, %c0_24] : memref<4x3x16x128xf32, #tpu.memory_space<vmem>>, vector<1x3x16x128xf32>
    %56 = vector.shape_cast %55 : vector<1x3x16x128xf32> to vector<3x16x128xf32>
    %57 = arith.index_cast %0 : i32 to index
    %c3_25 = arith.constant 3 : index
    %58 = memref.load %arg1[%57, %c3_25] : memref<24x4xf32, #tpu.memory_space<smem>>
    %59 = vector.broadcast %58 : f32 to vector<3x16x128xf32>
    %60 = arith.mulf %59, %56 : vector<3x16x128xf32>
    %61 = arith.addf %42, %60 : vector<3x16x128xf32>
    %c1_i32_26 = arith.constant 1 : i32
    %62 = arith.addi %0, %c1_i32_26 : i32
    %63 = arith.index_cast %62 : i32 to index
    %c3_27 = arith.constant 3 : index
    %64 = memref.load %arg1[%63, %c3_27] : memref<24x4xf32, #tpu.memory_space<smem>>
    %65 = vector.broadcast %64 : f32 to vector<3x16x128xf32>
    %66 = arith.mulf %65, %56 : vector<3x16x128xf32>
    %67 = arith.addf %48, %66 : vector<3x16x128xf32>
    %c2_i32_28 = arith.constant 2 : i32
    %68 = arith.addi %0, %c2_i32_28 : i32
    %69 = arith.index_cast %68 : i32 to index
    %c3_29 = arith.constant 3 : index
    %70 = memref.load %arg1[%69, %c3_29] : memref<24x4xf32, #tpu.memory_space<smem>>
    %71 = vector.broadcast %70 : f32 to vector<3x16x128xf32>
    %72 = arith.mulf %71, %56 : vector<3x16x128xf32>
    %73 = arith.addf %54, %72 : vector<3x16x128xf32>
    %cst = arith.constant dense<0.000000e+00> : vector<3x16xf32>
    %74 = vector.multi_reduction <add>, %61, %cst [2] : vector<3x16x128xf32> to vector<3x16xf32>
    %75 = vector.shape_cast %74 : vector<3x16xf32> to vector<3x16x1xf32>
    %cst_30 = arith.constant 6.250000e-02 : f32
    %76 = vector.broadcast %cst_30 : f32 to vector<3x16x1xf32>
    %77 = arith.mulf %75, %76 : vector<3x16x1xf32>
    %78 = vector.broadcast %77 : vector<3x16x1xf32> to vector<3x16x128xf32>
    %79 = arith.subf %61, %78 : vector<3x16x128xf32>
    %80 = arith.mulf %79, %79 : vector<3x16x128xf32>
    %cst_31 = arith.constant dense<0.000000e+00> : vector<16x128xf32>
    %81 = vector.multi_reduction <add>, %80, %cst_31 [0] : vector<3x16x128xf32> to vector<16x128xf32>
    %82 = math.sqrt %81 : vector<16x128xf32>
    %cst_32 = arith.constant 9.99999997E-7 : f32
    %83 = vector.broadcast %cst_32 : f32 to vector<16x128xf32>
    %84 = arith.addf %82, %83 : vector<16x128xf32>
    %85 = tpu.iota {dimensions = array<i32: 1>} : vector<16x128xi32>
    %c16_i32 = arith.constant 16 : i32
    %86 = vector.broadcast %c16_i32 : i32 to vector<16x128xi32>
    %87 = arith.cmpi slt, %85, %86 : vector<16x128xi32>
    %cst_33 = arith.constant 0.000000e+00 : f32
    %88 = vector.broadcast %cst_33 : f32 to vector<16x128xf32>
    %89 = arith.select %87, %84, %88 : vector<16x128xi1>, vector<16x128xf32>
    %90 = vector.shape_cast %89 : vector<16x128xf32> to vector<1x16x128xf32>
    %cst_34 = arith.constant dense<0.000000e+00> : vector<1xf32>
    %91 = vector.multi_reduction <add>, %90, %cst_34 [1, 2] : vector<1x16x128xf32> to vector<1xf32>
    %92 = vector.shape_cast %91 : vector<1xf32> to vector<1x1x1xf32>
    %93 = vector.extract %92[0, 0, 0] : f32 from vector<1x1x1xf32>
    %94 = vector.broadcast %93 : f32 to vector<1x1xf32>
    %cst_35 = arith.constant 3.906250e-03 : f32
    %95 = vector.broadcast %cst_35 : f32 to vector<1x1xf32>
    %96 = arith.mulf %94, %95 : vector<1x1xf32>
    %97 = vector.broadcast %96 : vector<1x1xf32> to vector<16x128xf32>
    %98 = arith.subf %84, %97 : vector<16x128xf32>
    %99 = arith.mulf %98, %98 : vector<16x128xf32>
    %cst_36 = arith.constant 0.000000e+00 : f32
    %100 = vector.broadcast %cst_36 : f32 to vector<16x128xf32>
    %101 = arith.select %87, %99, %100 : vector<16x128xi1>, vector<16x128xf32>
    %102 = vector.shape_cast %101 : vector<16x128xf32> to vector<1x16x128xf32>
    %cst_37 = arith.constant dense<0.000000e+00> : vector<1xf32>
    %103 = vector.multi_reduction <add>, %102, %cst_37 [1, 2] : vector<1x16x128xf32> to vector<1xf32>
    %104 = vector.shape_cast %103 : vector<1xf32> to vector<1x1x1xf32>
    %105 = vector.extract %104[0, 0, 0] : f32 from vector<1x1x1xf32>
    %106 = vector.broadcast %105 : f32 to vector<1x1xf32>
    %cst_38 = arith.constant 3.906250e-03 : f32
    %107 = vector.broadcast %cst_38 : f32 to vector<1x1xf32>
    %108 = arith.mulf %106, %107 : vector<1x1xf32>
    %cst_39 = arith.constant 9.99999974E-6 : f32
    %109 = vector.broadcast %cst_39 : f32 to vector<1x1xf32>
    %110 = arith.addf %108, %109 : vector<1x1xf32>
    %111 = math.rsqrt %110 : vector<1x1xf32>
    %112 = vector.broadcast %111 : vector<1x1xf32> to vector<16x128xf32>
    %113 = arith.mulf %98, %112 : vector<16x128xf32>
    %114 = tpu.reciprocal %84 {approx = true} : vector<16x128xf32> -> vector<16x128xf32>
    %115 = arith.mulf %113, %114 : vector<16x128xf32>
    %116 = vector.shape_cast %115 : vector<16x128xf32> to vector<1x16x128xf32>
    %117 = vector.broadcast %116 : vector<1x16x128xf32> to vector<3x16x128xf32>
    %118 = arith.mulf %79, %117 : vector<3x16x128xf32>
    %119 = vector.broadcast %77 : vector<3x16x1xf32> to vector<3x16x128xf32>
    %120 = arith.addf %118, %119 : vector<3x16x128xf32>
    %121 = arith.subf %120, %73 : vector<3x16x128xf32>
    %122 = arith.mulf %121, %67 : vector<3x16x128xf32>
    %cst_40 = arith.constant dense<0.000000e+00> : vector<16x128xf32>
    %123 = vector.multi_reduction <add>, %122, %cst_40 [0] : vector<3x16x128xf32> to vector<16x128xf32>
    %124 = arith.mulf %67, %67 : vector<3x16x128xf32>
    %cst_41 = arith.constant dense<0.000000e+00> : vector<16x128xf32>
    %125 = vector.multi_reduction <add>, %124, %cst_41 [0] : vector<3x16x128xf32> to vector<16x128xf32>
    %cst_42 = arith.constant 0.000000e+00 : f32
    %126 = vector.broadcast %cst_42 : f32 to vector<16x128xf32>
    %127 = arith.cmpf olt, %123, %126 : vector<16x128xf32>
    %cst_43 = arith.constant 0.000000e+00 : f32
    %128 = vector.broadcast %cst_43 : f32 to vector<16x128xf32>
    %129 = arith.select %127, %123, %128 : vector<16x128xi1>, vector<16x128xf32>
    %cst_44 = arith.constant 8.000000e-01 : f32
    %130 = vector.broadcast %cst_44 : f32 to vector<16x128xf32>
    %131 = arith.mulf %130, %129 : vector<16x128xf32>
    %cst_45 = arith.constant 9.99999997E-7 : f32
    %132 = vector.broadcast %cst_45 : f32 to vector<16x128xf32>
    %133 = arith.addf %125, %132 : vector<16x128xf32>
    %134 = tpu.reciprocal %133 {approx = true} : vector<16x128xf32> -> vector<16x128xf32>
    %135 = arith.mulf %131, %134 : vector<16x128xf32>
    %136 = vector.shape_cast %135 : vector<16x128xf32> to vector<1x16x128xf32>
    %137 = vector.broadcast %136 : vector<1x16x128xf32> to vector<3x16x128xf32>
    %138 = arith.mulf %137, %67 : vector<3x16x128xf32>
    %139 = arith.subf %120, %138 : vector<3x16x128xf32>
    %c0_46 = arith.constant 0 : index
    %c0_47 = arith.constant 0 : index
    %c0_48 = arith.constant 0 : index
    %c0_49 = arith.constant 0 : index
    %140 = vector.load %arg3[%c0_46, %c0_47, %c0_48, %c0_49] : memref<1x3x16x128xf32, #tpu.memory_space<vmem>>, vector<1x3x16x128xf32>
    %141 = vector.shape_cast %140 : vector<1x3x16x128xf32> to vector<3x16x128xf32>
    %142 = vector.shape_cast %139 : vector<3x16x128xf32> to vector<1x3x16x128xf32>
    tpu.vector_store %arg3[%c0_46, %c0_47, %c0_48, %c0_49], %142 {strides = array<i32>} : memref<1x3x16x128xf32, #tpu.memory_space<vmem>>, vector<1x3x16x128xf32>,
    return
  }
  func.func @transform_0(%arg0: i32) -> (i32, i32) {
    %c0_i32 = arith.constant 0 : i32
    %c0_i32_0 = arith.constant 0 : i32
    %c0_i32_1 = arith.constant 0 : i32
    return %c0_i32, %c0_i32_0 : i32, i32
  }
  func.func @transform_1(%arg0: i32) -> (i32, i32, i32, i32) {
    %c0_i32 = arith.constant 0 : i32
    %c0_i32_0 = arith.constant 0 : i32
    %c0_i32_1 = arith.constant 0 : i32
    %c0_i32_2 = arith.constant 0 : i32
    %c0_i32_3 = arith.constant 0 : i32
    return %c0_i32, %c0_i32_0, %c0_i32_1, %c0_i32_2 : i32, i32, i32, i32
  }
  func.func @transform_2(%arg0: i32) -> (i32, i32, i32, i32) {
    %c0_i32 = arith.constant 0 : i32
    %c0_i32_0 = arith.constant 0 : i32
    %c0_i32_1 = arith.constant 0 : i32
    %c0_i32_2 = arith.constant 0 : i32
    return %arg0, %c0_i32, %c0_i32_0, %c0_i32_1 : i32, i32, i32, i32
  }
}

</mosaic_0001>

<bundles_post_ra>
// kernel: vnt_linear_leaky_relu.1
= control target key start
LH: loop header
LB: loop body
LE: loop exit
PB: predicated region body
PF: predicated region fallthrough
CT: control target
= control target key end

     0   :  { %7 = vsyncpa [#allocation3], 0  ;;  %s669_s9 = smov 0   ;;  %s1067_s0 = inlined_call_operand.vmem [shape: f32[24,4], index: 0, kind: input, shape index: {}]   ;;  %s1068_s1 = inlined_call_operand.vmem [shape: f32[4,3,16,128], index: 1, kind: input, shape index: {}]   ;;  %s1069_s2 = inlined_call_operand.vmem [shape: f32[8,3,16,128], index: 2, kind: output, shape index: {}]  }
   0x1 LB: > { %s675_s10 = sadd.s32 4294967295, %s649_s9   ;;  %p550_p0 = scmp.ge.s32.totalorder %s649_s9, 1  ;;  %s649_s9 = sphi %s669_s9, %s13_s9  }
   0x2   : > { %p86_p1 = scmp.lt.s32.totalorder %s649_s9, 9  ;;  %s98_s13 = sshll.u32 %s1067_s0, 4  ;;  %s99_s13 = int_to_ptr.vmem [resolvable:$true] %s98_s13 }
   0x3   : > { %p597_p3 = scmp.eq.s32.totalorder %s675_s10, 0  ;;  %s624_s16 = scalar_lea.vmem %s99_s13, 384 }
   0x4   : > { %p682_p2 = pnand %p550_p0, %p86_p1  ;;  %p625_p6 = scmp.ne.s32.totalorder %s99_s13, %s624_s16 }
   0x5   : > { %p632_p10 = scmp.lt.s32.totalorder %s99_s13, %s99_s13  ;;  %p633_p11 = scmp.lt.s32.totalorder %s624_s16, %s624_s16 }
   0x6   : > { %p593_p4 = pneg %p682_p2 }
   0x7   : > { %p634_p12 = por %p633_p11, %p632_p10 }
   0x8   : > { %p691_p5 = pnand %p597_p3, %p593_p4 }
   0xa   : > { %p626_p7 = pneg %p691_p5 }
   0xc   : > { %p627_p8 = pnand %p626_p7, %p625_p6 }
   0xe   : > { %p628_p9 = pneg %p627_p8 }
  0x10   : > { %p635_p13 = pnand %p634_p12, %p628_p9 }
  0x12   : > { %638 = shalt.err (!%p635_p13)
}
  0x13   : > { %s651_s17 = smov [#allocation2]   ;;  %s652_s18 = smov 128  }
  0x14   : > { %s653_s19 = smov 8   ;;  %117 = sbr.rel (%p682_p2) target bundleno = 710 (0x2c6), region = 28 }
  0x15   : > { %596 = dma.vmem_to_smem (!%p691_p5), %s99_s13, 384, %s651_s17, [#allocation3], %s652_s18, %s652_s18, %s653_s19  }
  0x1b   : > { %644 = dma.done.wait (%p597_p3), [#allocation3], 384  }
  0x1c   : > { %646 = vsyncadd (%p597_p3), [#allocation3], 4294966912 }
  0x1d   : > { %123 = sfence }
  0x1e   : > { %s706_s20 = smul.u32 384, %s675_s10  ;;  %v143_v0 = vld [vmem:[%s1068_s1 + $0x10] sm:$0xff]  ;;  %v141_v1 = vld [vmem:[%s1068_s1] sm:$0xff]  ;;  %v144_v2 = vld [vmem:[%s1068_s1 + $0x18] sm:$0xff]  ;;  %p135_p0 = scmp.lt.s32.totalorder %s675_s10, 7 }
  0x1f   : > { %v560_v6 = vld [vmem:[%s1068_s1 + $0x40] sm:$0xff]  ;;  %v558_v8 = vld [vmem:[%s1068_s1 + $0x30] sm:$0xff]  ;;  %v758_v10 = vld [vmem:[%s1068_s1 + $0x48] sm:$0xff] }
  0x20   : > { %s148_s21 = sld [smem:[#allocation2 + %s706_s20]]  ;;  %s710_s22 = sadd.s32 128, %s706_s20  ;;  %v566_v21 = vld [vmem:[%s1068_s1 + $0x70] sm:$0xff]  ;;  %v564_v32 = vld [vmem:[%s1068_s1 + $0x60] sm:$0xff]  ;;  %v567_v63 = vld [vmem:[%s1068_s1 + $0x78] sm:$0xff] }
  0x21   : > { %s158_s23 = sld [smem:[#allocation2 + %s710_s22]]  ;;  %s714_s24 = sadd.s32 256, %s706_s20  ;;  %v572_v36 = vld [vmem:[%s1068_s1 + $0xa0] sm:$0xff]  ;;  %v570_v50 = vld [vmem:[%s1068_s1 + $0x90] sm:$0xff] }
  0x22   : > { %s168_s25 = sld [smem:[#allocation2 + %s714_s24]]  ;;  %s183_s26 = sadd.s32 1, %s706_s20 }
  0x23   : > { %s184_s27 = sld [smem:[#allocation2 + %s183_s26]]  ;;  %s198_s28 = sadd.s32 1, %s710_s22 }
  0x24   : > { %s722_s3 = sld [smem:[#allocation2 + %s198_s28]]  ;;  %s213_s4 = sadd.s32 1, %s714_s24 }
  0x25   : > { %s731_s11 = sld [smem:[#allocation2 + %s213_s4]]  ;;  %s235_s12 = sadd.s32 2, %s706_s20 }
  0x26   : > { %v734_v3 = vstv %s148_s21  ;;  %s736_s13 = sld [smem:[#allocation2 + %s235_s12]]  ;;  %s250_s14 = sadd.s32 2, %s710_s22 }
  0x27   : > { %v152_v4 = vmul.f32 %v734_v3, %v143_v0  ;;  %v740_v5 = vstv %s158_s23  ;;  %s745_s17 = sld [smem:[#allocation2 + %s250_s14]]  ;;  %s265_s18 = sadd.s32 2, %s714_s24  ;;  %v150_v7 = vmul.f32 %v734_v3, %v141_v1  ;;  %v753_v9 = vmul.f32 %v734_v3, %v144_v2 }
  0x28   : > { %v162_v11 = vmul.f32 %v740_v5, %v143_v0  ;;  %v761_v12 = vstv %s168_s25  ;;  %s763_s28 = sld [smem:[#allocation2 + %s265_s18]]  ;;  %s287_s29 = sadd.s32 3, %s706_s20  ;;  %v160_v13 = vmul.f32 %v740_v5, %v141_v1  ;;  %v768_v14 = vmul.f32 %v740_v5, %v144_v2 }
  0x29   : > { %v172_v15 = vmul.f32 %v761_v12, %v143_v0  ;;  %v771_v16 = vstv %s184_s27  ;;  %s773_s30 = sld [smem:[#allocation2 + %s287_s29]]  ;;  %s302_s4 = sadd.s32 3, %s710_s22  ;;  %v170_v17 = vmul.f32 %v761_v12, %v141_v1  ;;  %v778_v18 = vmul.f32 %v761_v12, %v144_v2 }
  0x2a   : > { %v188_v19 = vmul.f32 %v560_v6, %v771_v16  ;;  %v782_v20 = vstv %s722_s3  ;;  %s303_s5 = sld [smem:[#allocation2 + %s302_s4]]  ;;  %s317_s27 = sadd.s32 3, %s714_s24  ;;  %v186_v22 = vmul.f32 %v558_v8, %v771_v16  ;;  %v189_v23 = vmul.f32 %v758_v10, %v771_v16 }
  0x2b   : > { %v203_v24 = vmul.f32 %v560_v6, %v782_v20  ;;  %v793_v25 = vstv %s731_s11  ;;  %s318_s22 = sld [smem:[#allocation2 + %s317_s27]]  ;;  %v201_v26 = vmul.f32 %v558_v8, %v782_v20  ;;  %v204_v27 = vmul.f32 %v758_v10, %v782_v20  ;;  %s1073_s10 = smov (!%p135_p0, %s675_s10), 7 }
  0x2c   : > { %v194_v28 = vadd.f32 %v188_v19, %v152_v4  ;;  %v218_v29 = vmul.f32 %v560_v6, %v793_v25  ;;  %v800_v30 = vstv %s736_s13  ;;  %v192_v31 = vadd.f32 %v186_v22, %v150_v7  ;;  %v573_v6 = vld [vmem:[%s1068_s1 + $0xa8] sm:$0xff]  ;;  %s584_s16 = smul.u32 48, %s1073_s10 }
  0x2d   : > { %v209_v33 = vadd.f32 %v203_v24, %v162_v11  ;;  %v240_v34 = vmul.f32 %v566_v21, %v800_v30  ;;  %v807_v35 = vstv %s745_s17  ;;  %v207_v37 = vadd.f32 %v201_v26, %v160_v13  ;;  %v559_v24 = vld [vmem:[%s1068_s1 + $0x38] sm:$0xff] }
  0x2e   : > { %v224_v38 = vadd.f32 %v218_v29, %v172_v15  ;;  %v255_v39 = vmul.f32 %v566_v21, %v807_v35  ;;  %v814_v40 = vstv %s763_s28  ;;  %v216_v41 = vmul.f32 %v558_v8, %v793_v25  ;;  %s139_s19 = scalar_lea.vmem %s1069_s2, %s584_s16 }
  0x2f   : > { %v246_v42 = vadd.f32 %v240_v34, %v194_v28  ;;  %v270_v43 = vmul.f32 %v566_v21, %v814_v40  ;;  %v819_v44 = vstv %s773_s30  ;;  %v238_v45 = vmul.f32 %v564_v32, %v800_v30  ;;  %v142_v21 = vld [vmem:[%s1068_s1 + $0x8] sm:$0xff] }
  0x30   : > { %v261_v46 = vadd.f32 %v255_v39, %v209_v33  ;;  %v292_v47 = vmul.f32 %v572_v36, %v819_v44  ;;  %v823_v48 = vstv %s303_s5  ;;  %v222_v49 = vadd.f32 %v216_v41, %v170_v17  ;;  %v571_v41 = vld [vmem:[%s1068_s1 + $0x98] sm:$0xff] }
  0x31   : > { %v276_v51 = vadd.f32 %v270_v43, %v224_v38  ;;  %v307_v52 = vmul.f32 %v572_v36, %v823_v48  ;;  %v829_v53 = vstv %s318_s22  ;;  %v244_v54 = vadd.f32 %v238_v45, %v192_v31 }
  0x32   : > { %v831_v55 = vadd.f32 %v292_v47, %v246_v42  ;;  %v322_v56 = vmul.f32 %v572_v36, %v829_v53  ;;  %v253_v57 = vmul.f32 %v564_v32, %v807_v35  ;;  %v268_v58 = vmul.f32 %v564_v32, %v814_v40  ;;  %v146_v47 = vld [vmem:[%s1068_s1 + $0x28] sm:$0xff] }
  0x33   : > { %v836_v59 = vadd.f32 %v307_v52, %v261_v46  ;;  %v290_v60 = vmul.f32 %v570_v50, %v819_v44  ;;  %v305_v61 = vmul.f32 %v570_v50, %v823_v48  ;;  %v320_v62 = vmul.f32 %v570_v50, %v829_v53 }
  0x34   : > { %v844_v0 = vadd.f32 %v322_v56, %v276_v51  ;;  %336 = vadd.xlane.f32.xlu1 %v831_v55  ;;  %v259_v1 = vadd.f32 %v253_v57, %v207_v37  ;;  %v274_v2 = vadd.f32 %v268_v58, %v222_v49  ;;  %v195_v4 = vadd.f32 %v189_v23, %v753_v9 }
  0x35   : > { %v455_v7 = vmul.f32 %v836_v59, %v836_v59  ;;  %v853_v8 = vadd.f32 %v290_v60, %v244_v54  ;;  %v210_v11 = vadd.f32 %v204_v27, %v768_v14  ;;  %v219_v13 = vmul.f32 %v758_v10, %v793_v25  ;;  %v563_v54 = vld [vmem:[%s1068_s1 + $0x58] sm:$0xff] }
  0x36   : > { %v858_v15 = vadd.f32 %v305_v61, %v259_v1  ;;  %v860_v17 = vadd.f32 %v320_v62, %v274_v2  ;;  %v241_v9 = vmul.f32 %v567_v63, %v800_v30  ;;  %v256_v19 = vmul.f32 %v567_v63, %v807_v35  ;;  %v569_v61 = vld [vmem:[%s1068_s1 + $0x88] sm:$0xff] }
  0x37   : > { %332 = vadd.xlane.f32.xlu0 %v853_v8  ;;  %v225_v22 = vadd.f32 %v219_v13, %v778_v18  ;;  %v271_v14 = vmul.f32 %v567_v63, %v814_v40  ;;  %v293_v10 = vmul.f32 %v573_v6, %v819_v44  ;;  %v308_v23 = vmul.f32 %v573_v6, %v823_v48  ;;  %v565_v18 = vld [vmem:[%s1068_s1 + $0x68] sm:$0xff]  ;;  %v575_v13 = vld [vmem:[%s1068_s1 + $0xb8] sm:$0xff] }
  0x38   : > { %v453_v26 = vmul.f32 %v858_v15, %v858_v15  ;;  %v247_v27 = vadd.f32 %v241_v9, %v195_v4  ;;  %v262_v28 = vadd.f32 %v256_v19, %v210_v11  ;;  %v323_v29 = vmul.f32 %v573_v6, %v829_v53 }
  0x39   : > { %v277_v31 = vadd.f32 %v271_v14, %v225_v22  ;;  %v151_v32 = vmul.f32 %v734_v3, %v142_v21  ;;  %v161_v33 = vmul.f32 %v740_v5, %v142_v21  ;;  %v171_v34 = vmul.f32 %v761_v12, %v142_v21 }
  0x3a   : > { %v884_v36 = vadd.f32 %v455_v7, %v453_v26  ;;  %v886_v37 = vadd.f32 %v293_v10, %v247_v27  ;;  %v888_v38 = vadd.f32 %v308_v23, %v262_v28  ;;  %v187_v39 = vmul.f32 %v559_v24, %v771_v16  ;;  %v145_v26 = vld [vmem:[%s1068_s1 + $0x20] sm:$0xff] }
  0x3b   : > { %v894_v42 = vadd.f32 %v323_v29, %v277_v31  ;;  %v202_v43 = vmul.f32 %v559_v24, %v782_v20  ;;  %v217_v45 = vmul.f32 %v559_v24, %v793_v25  ;;  %v239_v46 = vmul.f32 %v565_v18, %v800_v30  ;;  %v562_v31 = vld [vmem:[%s1068_s1 + $0x50] sm:$0xff] }
  0x3c   : > { %v456_v49 = vmul.f32 %v888_v38, %v888_v38  ;;  %338 = vadd.xlane.f32.xlu1 %v886_v37  ;;  %v193_v50 = vadd.f32 %v187_v39, %v151_v32  ;;  %v254_v51 = vmul.f32 %v565_v18, %v807_v35  ;;  %v269_v52 = vmul.f32 %v565_v18, %v814_v40 }
  0x3d   : > { %v208_v56 = vadd.f32 %v202_v43, %v161_v33  ;;  %v223_v57 = vadd.f32 %v217_v45, %v171_v34  ;;  %v291_v58 = vmul.f32 %v571_v41, %v819_v44  ;;  %v306_v60 = vmul.f32 %v571_v41, %v823_v48 }
  0x3e   : > { %v245_v62 = vadd.f32 %v239_v46, %v193_v50  ;;  %v321_v63 = vmul.f32 %v571_v41, %v829_v53  ;;  %v155_v1 = vmul.f32 %v734_v3, %v146_v47  ;;  %v165_v2 = vmul.f32 %v740_v5, %v146_v47 }
  0x3f   : > { %v260_v4 = vadd.f32 %v254_v51, %v208_v56  ;;  %v275_v6 = vadd.f32 %v269_v52, %v223_v57  ;;  %v175_v7 = vmul.f32 %v761_v12, %v146_v47  ;;  %v191_v11 = vmul.f32 %v563_v54, %v771_v16  ;;  %v568_v47 = vld [vmem:[%s1068_s1 + $0x80] sm:$0xff]  ;;  %v574_v56 = vld [vmem:[%s1068_s1 + $0xb0] sm:$0xff] }
  0x40   : > { %v297_v9 = vadd.f32 %v291_v58, %v245_v62  ;;  %v206_v19 = vmul.f32 %v563_v54, %v782_v20  ;;  %v221_v21 = vmul.f32 %v563_v54, %v793_v25  ;;  %v243_v22 = vmul.f32 %v569_v61, %v800_v30 }
  0x41   : > { %v926_v14 = vadd.f32 %v306_v60, %v260_v4  ;;  %v928_v10 = vadd.f32 %v321_v63, %v275_v6  ;;  %v197_v23 = vadd.f32 %v191_v11, %v155_v1  ;;  %v258_v24 = vmul.f32 %v569_v61, %v807_v35 }
  0x42   : > { %334 = vadd.xlane.f32.xlu0 %v297_v9  ;;  %v212_v27 = vadd.f32 %v206_v19, %v165_v2  ;;  %v227_v28 = vadd.f32 %v221_v21, %v175_v7  ;;  %v273_v29 = vmul.f32 %v569_v61, %v814_v40  ;;  %v295_v18 = vmul.f32 %v575_v13, %v819_v44 }
  0x43   : > { %v454_v32 = vmul.f32 %v926_v14, %v926_v14  ;;  %v249_v33 = vadd.f32 %v243_v22, %v197_v23  ;;  %v310_v34 = vmul.f32 %v575_v13, %v823_v48  ;;  %v325_v39 = vmul.f32 %v575_v13, %v829_v53 }
  0x44   : > { %v264_v41 = vadd.f32 %v258_v24, %v212_v27  ;;  %v279_v43 = vadd.f32 %v273_v29, %v227_v28  ;;  %v154_v45 = vmul.f32 %v734_v3, %v145_v26  ;;  %v164_v46 = vmul.f32 %v740_v5, %v145_v26 }
  0x45   : > { %v461_v50 = vadd.f32 %v456_v49, %v454_v32  ;;  %v301_v51 = vadd.f32 %v295_v18, %v249_v33  ;;  %v174_v52 = vmul.f32 %v761_v12, %v145_v26  ;;  %v190_v54 = vmul.f32 %v562_v31, %v771_v16 }
  0x46   : > { %v953_v57 = vadd.f32 %v310_v34, %v264_v41  ;;  %v955_v58 = vadd.f32 %v325_v39, %v279_v43  ;;  %v205_v3 = vmul.f32 %v562_v31, %v782_v20  ;;  %v220_v5 = vmul.f32 %v562_v31, %v793_v25 }
  0x47   : > { %342 = vadd.xlane.f32.xlu1 %v301_v51  ;;  %v196_v60 = vadd.f32 %v190_v54, %v154_v45  ;;  %v242_v49 = vmul.f32 %v568_v47, %v800_v30  ;;  %v257_v12 = vmul.f32 %v568_v47, %v807_v35  ;;  %v272_v16 = vmul.f32 %v568_v47, %v814_v40 }
  0x48   : > { %v458_v61 = vmul.f32 %v953_v57, %v953_v57  ;;  %v211_v62 = vadd.f32 %v205_v3, %v164_v46  ;;  %v226_v63 = vadd.f32 %v220_v5, %v174_v52  ;;  %v294_v1 = vmul.f32 %v574_v56, %v819_v44 }
  0x49   : > { %v248_v2 = vadd.f32 %v242_v49, %v196_v60  ;;  %v309_v20 = vmul.f32 %v574_v56, %v823_v48  ;;  %v324_v25 = vmul.f32 %v574_v56, %v829_v53 }
  0x4a   : > { %v967_v4 = vadd.f32 %v461_v50, %v458_v61  ;;  %v263_v6 = vadd.f32 %v257_v12, %v211_v62  ;;  %v278_v30 = vadd.f32 %v272_v16, %v226_v63 }
  0x4b   : > { %v300_v7 = vadd.f32 %v294_v1, %v248_v2 }
  0x4c   : > { %v969_v35 = vadd.f32 %v309_v20, %v263_v6  ;;  %v971_v40 = vadd.f32 %v324_v25, %v278_v30 }
  0x4d   : > { %340 = vadd.xlane.f32.xlu0 %v300_v7 }
  0x4e   : > { %v457_v11 = vmul.f32 %v969_v35, %v969_v35 }
  0x50   : > { %v976_v44 = vadd.f32 %v884_v36, %v457_v11 }
  0xc1   : > { %v337_v13 = vpop.xlane.xlu1 %336 }
  0xc2   : > { %v989_v26 = vmul.f32 0.0625, %v337_v13 }
  0xc4   : > { %v333_v48 = vpop.xlane.xlu0 %332 }
  0xc5   : > { %v991_v27 = vmul.f32 0.0625, %v333_v48 }
  0xc9   : > { %v339_v19 = vpop.xlane.xlu1 %338 }
  0xca   : > { %v978_v53 = vmul.f32 0.0625, %v339_v19 }
  0xcc   : > { %v984_v23 = vsub.f32 %v886_v37, %v978_v53  ;;  %v1001_v37 = vsub.f32 %v831_v55, %v989_v26 }
  0xce   : > { %v359_v28 = vmul.f32 %v984_v23, %v984_v23  ;;  %v358_v39 = vmul.f32 %v1001_v37, %v1001_v37 }
  0xcf   : > { %v335_v21 = vpop.xlane.xlu0 %334 }
  0xd0   : > { %v980_v22 = vmul.f32 0.0625, %v335_v21 }
  0xd2   : > { %v987_v24 = vsub.f32 %v297_v9, %v980_v22  ;;  %v1005_v9 = vsub.f32 %v853_v8, %v991_v27 }
  0xd4   : > { %v343_v36 = vpop.xlane.xlu1 %342  ;;  %v357_v29 = vmul.f32 %v987_v24, %v987_v24  ;;  %v356_v41 = vmul.f32 %v1005_v9, %v1005_v9 }
  0xd5   : > { %v997_v18 = vmul.f32 0.0625, %v343_v36 }
  0xd6   : > { %v364_v32 = vadd.f32 %v359_v28, %v357_v29  ;;  %v362_v45 = vadd.f32 %v358_v39, %v356_v41 }
  0xd7   : > { %v1008_v31 = vsub.f32 %v301_v51, %v997_v18  ;;  %v382_v51 = vlaneseq }
  0xd9   : > { %v361_v33 = vmul.f32 %v1008_v31, %v1008_v31  ;;  %v383_v5 = vand.u32 127, %v382_v51 }
  0xda   : > { %v341_v34 = vpop.xlane.xlu0 %340 }
  0xdb   : > { %v365_v55 = vadd.f32 %v364_v32, %v361_v33  ;;  %v1016_v43 = vmul.f32 0.0625, %v341_v34  ;;  %vm384_vm3 = vcmp.lt.s32.totalorder %v383_v5, 16 }
  0xdd   : > { %610 = vrsqrt.f32 %v365_v55  ;;  %v1019_v8 = vsub.f32 %v300_v7, %v1016_v43  ;;  %vm375_vm0 = vcmp.eq.f32.partialorder %v365_v55, inf  ;;  %v378_v54 = vand.u32 2147483648, %v365_v55 }
  0xde   : > { %vm377_vm1 = vcmp.eq.f32.partialorder %v365_v55, 0.0 }
  0xdf   : > { %v360_v46 = vmul.f32 %v1019_v8, %v1019_v8 }
  0xe1   : > { %v363_v47 = vadd.f32 %v362_v45, %v360_v46 }
  0xe3   : > { %612 = vrsqrt.f32 %v363_v47  ;;  %vm368_vm2 = vcmp.eq.f32.partialorder %v363_v47, inf  ;;  %v371_v16 = vand.u32 2147483648, %v363_v47  ;;  %vm370_vm4 = vcmp.eq.f32.partialorder %v363_v47, 0.0 }
  0xe7   : > { %v611_v50 = vpop.eup %610 }
  0xe8   : > { %v374_v52 = vmul.f32 %v611_v50, %v365_v55 }
  0xea   : > { %v376_v56 = vsel %vm375_vm0, %v365_v55, %v374_v52 }
  0xeb   : > { %v379_v3 = vsel %vm377_vm1, %v378_v54, %v376_v56 }
  0xec   : > { %v381_v12 = vadd.f32 1e-06, %v379_v3 }
  0xed   : > { %v613_v60 = vpop.eup %612 }
  0xee   : > { %v367_v49 = vmul.f32 %v613_v60, %v363_v47  ;;  %v386_v1 = vsel %vm384_vm3, %v381_v12, 0.0 }
  0xf0   : > { %v369_v61 = vsel %vm368_vm2, %v363_v47, %v367_v49 }
  0xf1   : > { %v372_v62 = vsel %vm370_vm4, %v371_v16, %v369_v61  ;;  %v470_v61 = vadd.f32 1e-06, %v967_v4 }
  0xf2   : > { %v380_v63 = vadd.f32 1e-06, %v372_v62 }
  0xf4   : > { %v385_v2 = vsel %vm384_vm3, %v380_v63, 0.0 }
  0xf5   : > { %v387_v20 = vadd.f32 %v386_v1, %v385_v2  ;;  %v469_v2 = vadd.f32 1e-06, %v976_v44 }
  0xf7   : > { %388 = vadd.xlane.f32.xlu0 %v387_v20 }
 0x184   : > { %v389_v25 = vpop.xlane.xlu0 %388 }
 0x185   : > { %v390_v6 = vrot.slane %v389_v25, 4 }
 0x187   : > { %v391_v30 = vadd.f32 %v390_v6, %v389_v25 }
 0x189   : > { %v392_v7 = vrot.slane %v391_v30, 2 }
 0x18b   : > { %v393_v11 = vadd.f32 %v392_v7, %v391_v30 }
 0x18d   : > { %v394_v13 = vrot.slane %v393_v11, 1 }
 0x18f   : > { %v395_v48 = vadd.f32 %v394_v13, %v393_v11 }
 0x191   : > { %585 = vpush %v395_v48 }
 0x1c2   : > { %s586_s14 = spop %585 }
 0x1c3   : > { %v397_v19 = vstv %s586_s14 }
 0x1c4   : > { %v398_v21 = vmul.f32 0.00390625, %v397_v19 }
 0x1c6   : > { %v399_v36 = vsub.f32 %v380_v63, %v398_v21  ;;  %v400_v28 = vsub.f32 %v381_v12, %v398_v21 }
 0x1c8   : > { %v401_v29 = vmul.f32 %v399_v36, %v399_v36  ;;  %v402_v32 = vmul.f32 %v400_v28, %v400_v28 }
 0x1ca   : > { %v403_v33 = vsel %vm384_vm3, %v401_v29, 0.0  ;;  %v404_v34 = vsel %vm384_vm3, %v402_v32, 0.0 }
 0x1cb   : > { %v405_v39 = vadd.f32 %v404_v34, %v403_v33 }
 0x1cd   : > { %406 = vadd.xlane.f32.xlu1 %v405_v39 }
 0x25a   : > { %v407_v41 = vpop.xlane.xlu1 %406 }
 0x25b   : > { %v408_v55 = vrot.slane %v407_v41, 4 }
 0x25d   : > { %v409_v45 = vadd.f32 %v408_v55, %v407_v41 }
 0x25f   : > { %v410_v46 = vrot.slane %v409_v45, 2 }
 0x261   : > { %v411_v47 = vadd.f32 %v410_v46, %v409_v45 }
 0x263   : > { %v412_v50 = vrot.slane %v411_v47, 1 }
 0x265   : > { %v413_v51 = vadd.f32 %v412_v50, %v411_v47 }
 0x267   : > { %587 = vpush %v413_v51 }
 0x298   : > { %s588_s15 = spop %587 }
 0x299   : > { %v415_v52 = vstv %s588_s15 }
 0x29a   : > { %v416_v54 = vmul.f32 0.00390625, %v415_v52 }
 0x29c   : > { %v417_v56 = vadd.f32 1e-05, %v416_v54 }
 0x29e   : > { %614 = vrsqrt.f32 %v417_v56 }
 0x29f   : > { %616 = vrcp.f32 %v381_v12 }
 0x2a0   : > { %618 = vrcp.f32 %v380_v63 }
 0x2a1   : > { %620 = vrcp.f32 %v470_v61 }
 0x2a2   : > { %622 = vrcp.f32 %v469_v2 }
 0x2a8   : > { %v615_v3 = vpop.eup %614 }
 0x2a9   : > { %v617_v5 = vpop.eup %616  ;;  %v419_v60 = vmul.f32 %v615_v3, %v399_v36  ;;  %v420_v49 = vmul.f32 %v615_v3, %v400_v28 }
 0x2aa   : > { %v619_v16 = vpop.eup %618 }
 0x2ab   : > { %v423_v62 = vmul.f32 %v619_v16, %v419_v60  ;;  %v424_v1 = vmul.f32 %v617_v5, %v420_v49 }
 0x2ad   : > { %v425_v20 = vmul.f32 %v423_v62, %v1005_v9  ;;  %v426_v25 = vmul.f32 %v424_v1, %v987_v24  ;;  %v427_v6 = vmul.f32 %v423_v62, %v1001_v37  ;;  %v428_v12 = vmul.f32 %v424_v1, %v984_v23 }
 0x2ae   : > { %v429_v63 = vmul.f32 %v423_v62, %v1019_v8  ;;  %v430_v30 = vmul.f32 %v424_v1, %v1008_v31 }
 0x2af   : > { %v431_v7 = vadd.f32 %v425_v20, %v991_v27  ;;  %v432_v4 = vadd.f32 %v426_v25, %v980_v22  ;;  %v433_v44 = vadd.f32 %v427_v6, %v989_v26  ;;  %v434_v9 = vadd.f32 %v428_v12, %v978_v53 }
 0x2b0   : > { %v435_v24 = vadd.f32 %v429_v63, %v1016_v43  ;;  %v436_v37 = vadd.f32 %v430_v30, %v997_v18 }
 0x2b1   : > { %v437_v23 = vsub.f32 %v431_v7, %v860_v17  ;;  %v438_v8 = vsub.f32 %v432_v4, %v928_v10  ;;  %v439_v31 = vsub.f32 %v433_v44, %v844_v0  ;;  %v440_v27 = vsub.f32 %v434_v9, %v894_v42 }
 0x2b2   : > { %v441_v22 = vsub.f32 %v435_v24, %v971_v40  ;;  %v442_v26 = vsub.f32 %v436_v37, %v955_v58  ;;  %v621_v40 = vpop.eup %620 }
 0x2b3   : > { %v443_v53 = vmul.f32 %v437_v23, %v858_v15  ;;  %v444_v11 = vmul.f32 %v438_v8, %v926_v14  ;;  %v445_v43 = vmul.f32 %v439_v31, %v836_v59  ;;  %v446_v18 = vmul.f32 %v440_v27, %v888_v38  ;;  %v623_v58 = vpop.eup %622 }
 0x2b4   : > { %v447_v17 = vmul.f32 %v441_v22, %v969_v35  ;;  %v448_v0 = vmul.f32 %v442_v26, %v953_v57 }
 0x2b5   : > { %v449_v10 = vadd.f32 %v445_v43, %v443_v53  ;;  %v451_v13 = vadd.f32 %v446_v18, %v444_v11 }
 0x2b7   : > { %v450_v42 = vadd.f32 %v449_v10, %v447_v17  ;;  %v452_v48 = vadd.f32 %v451_v13, %v448_v0 }
 0x2b9   : > { %vm463_vm5 = vcmp.lt.f32.partialorder %v450_v42, 0.0  ;;  %vm464_vm6 = vcmp.lt.f32.partialorder %v452_v48, 0.0 }
 0x2ba   : > { %v465_v19 = vsel %vm463_vm5, %v450_v42, 0.0  ;;  %v466_v21 = vsel %vm464_vm6, %v452_v48, 0.0 }
 0x2bb   : > { %v467_v36 = vmul.f32 0.8, %v465_v19  ;;  %v468_v28 = vmul.f32 0.8, %v466_v21 }
 0x2bd   : > { %v473_v29 = vmul.f32 %v623_v58, %v467_v36  ;;  %v474_v32 = vmul.f32 %v621_v40, %v468_v28 }
 0x2bf   : > { %v475_v33 = vmul.f32 %v473_v29, %v858_v15  ;;  %v476_v34 = vmul.f32 %v474_v32, %v926_v14  ;;  %v477_v39 = vmul.f32 %v473_v29, %v836_v59  ;;  %v478_v41 = vmul.f32 %v474_v32, %v888_v38 }
 0x2c0   : > { %v479_v55 = vmul.f32 %v473_v29, %v969_v35  ;;  %v480_v45 = vmul.f32 %v474_v32, %v953_v57 }
 0x2c1   : > { %v481_v46 = vsub.f32 %v431_v7, %v475_v33  ;;  %v482_v47 = vsub.f32 %v432_v4, %v476_v34  ;;  %v483_v50 = vsub.f32 %v433_v44, %v477_v39  ;;  %v484_v51 = vsub.f32 %v434_v9, %v478_v41 }
 0x2c2   : > { %v485_v52 = vsub.f32 %v435_v24, %v479_v55  ;;  %v486_v15 = vsub.f32 %v436_v37, %v480_v45 }
 0x2c3   : > { %487 = vst [vmem:[%s139_s19] sm:$0xff] %v481_v46  ;;  %488 = vst [vmem:[%s139_s19 + $0x8] sm:$0xff] %v482_v47 }
 0x2c4   : > { %489 = vst [vmem:[%s139_s19 + $0x10] sm:$0xff] %v483_v50  ;;  %490 = vst [vmem:[%s139_s19 + $0x18] sm:$0xff] %v484_v51 }
 0x2c5   : > { %491 = vst [vmem:[%s139_s19 + $0x20] sm:$0xff] %v485_v52  ;;  %492 = vst [vmem:[%s139_s19 + $0x28] sm:$0xff] %v486_v15 }
 0x2c6 PF: > { %s13_s9 = sadd.s32 1, %s649_s9  }
 0x2c7   : > { %p10_p1 = scmp.ge.s32.totalorder %s13_s9, 10  }
 0x2c9   :  { %12 = sbr.rel (!%p10_p1) target bundleno = 1 (0x1), region = 63 }
 0x2d0   :  { %514 = vsyncpa [#allocation3], 1 }
 0x2d1   :  { %516 = vsyncpa [#allocation3 + $0x1], 1 }

</bundles_post_ra>
